<compile_context>
chip_gen: v7x
topology: tpu7x:2x2x1
jax: 0.10.0
libtpu: 0.0.40
codegen_flags: <defaults>
</compile_context>

<pallas_src>
import math

import jax
import jax.numpy as jnp
from jax import lax
from jax.experimental import pallas as pl
from jax.experimental.pallas import tpu as pltpu


def _fourier_layer_kernel(x_ref, w2d_ref, cb_ref, wr_ref, wi_ref, f_ref, g_ref,
                          out_ref):
    """One batch block of Conv1d(stride=1,'same') + truncated-rDFT SpectralConv1d.

    All large contractions are MXU matmuls with L dense on the lane axis and the
    batch block folded into the row axis; only the tiny per-mode complex channel
    mix (Bt*Ci*Co*M elements) stays on the VPU.
    """
    f32 = jnp.float32
    Bt, Ci, L = x_ref.shape
    Co, KCi = w2d_ref.shape
    K = KCi // Ci
    M = wr_ref.shape[-1]
    pad = (K - 1) // 2

    x = x_ref[...]                                   # (Bt, Ci, L)   mxu dtype
    w2d = w2d_ref[...]                               # (Co, K*Ci)    mxu dtype
    cb = cb_ref[...]                                 # (Co, 1)       f32
    wr = wr_ref[...]                                 # (Ci, Co, M)   f32
    wi = wi_ref[...]                                 # (Ci, Co, M)   f32
    fcat = f_ref[...]                                # (L, 2M)  [cos | -sin]
    gcat = g_ref[...]                                # (2M, L)  [c/L*cos ; -c/L*sin]

    # ---- Conv1d ('same'): one zero halo per block, im2col, one batched MXU matmul
    if pad > 0:
        zp = jnp.zeros((Bt, Ci, pad), x.dtype)
        xp = jnp.concatenate([zp, x, zp], axis=-1)   # (Bt, Ci, L + 2*pad)
    else:
        xp = x
    # im2col stack: channel index c = t*Ci + i  (tap-major, matches w2d layout)
    stack = jnp.concatenate([xp[:, :, t:t + L] for t in range(K)], axis=1)  # (Bt, K*Ci, L)
    wb = jnp.broadcast_to(w2d[None], (Bt, Co, KCi))
    conv = jnp.einsum("boc,bcl->bol", wb, stack,
                      preferred_element_type=f32)    # (Bt, Co, L)

    # ---- SpectralConv1d: fused real/imag truncated rDFT (single MXU dot)
    xf = jnp.dot(x.reshape(Bt * Ci, L), fcat,
                 preferred_element_type=f32)         # (Bt*Ci, 2M) = [Re | Im]
    xf = xf.reshape(Bt, Ci, 2 * M)
    xr = xf[:, :, :M][:, :, None, :]                 # (Bt, Ci, 1, M)
    xi = xf[:, :, M:][:, :, None, :]

    # per-mode complex channel mix: Y[b,o,m] = sum_i X[b,i,m] * W[i,o,m]   (VPU)
    yr = jnp.sum(xr * wr[None] - xi * wi[None], axis=1)     # (Bt, Co, M)
    yi = jnp.sum(xr * wi[None] + xi * wr[None], axis=1)     # (Bt, Co, M)
    ycat = jnp.concatenate([yr, yi], axis=-1).reshape(Bt * Co, 2 * M)

    # fused inverse truncated rDFT (Hermitian completion folded into gcat)
    spec = jnp.dot(ycat.astype(gcat.dtype), gcat,
                   preferred_element_type=f32).reshape(Bt, Co, L)

    # one lane-dense slab store per grid step
    out_ref[...] = (conv + spec + cb[None]).astype(out_ref.dtype)


def _dft_bases(L, modes):
    """Forward (L, 2M) and inverse (2M, L) truncated real-DFT bases."""
    m = jnp.arange(modes, dtype=jnp.float32)
    l = jnp.arange(L, dtype=jnp.float32)
    ang = 2.0 * math.pi * m[:, None] * l[None, :] / float(L)        # (M, L)
    cos, sin = jnp.cos(ang), jnp.sin(ang)
    fcat = jnp.concatenate([cos, -sin], axis=0).T                   # (L, 2M)
    # Hermitian-completion weights for irfft of a truncated half-spectrum:
    # c_0 = 1, c_{L/2} = 1 (if present), otherwise 2.  (Im at m=0, L/2 is
    # multiplied by sin == 0, i.e. discarded — same as jnp.fft.irfft.)
    c = jnp.array([1.0 if (k == 0 or (L % 2 == 0 and k == L // 2)) else 2.0
                   for k in range(modes)], dtype=jnp.float32)
    gcat = jnp.concatenate([(c[:, None] / float(L)) * cos,
                            -(c[:, None] / float(L)) * sin], axis=0)  # (2M, L)
    return fcat, gcat


def _pick_batch_tile_and_vmem(B, Ci, Co, L, K, M, max_bt, itemsize):
    """VMEM-aware batch tile + explicit scoped-VMEM limit."""
    try:
        cap = int(getattr(pltpu.get_tpu_info(), "vmem_capacity_bytes",
                          64 * 1024 * 1024))
    except Exception:
        cap = 64 * 1024 * 1024          # conservative (v7x per-TensorCore VMEM)
    usable = cap // 2                   # headroom for compiler scratch / spills
    f32b = 4
    const_bytes = (itemsize * (Co * K * Ci + 4 * M * L)          # conv taps + DFT bases
                   + f32b * (Co + 2 * Ci * Co * M))              # bias + spectral weights
    per_b = (2 * itemsize * Ci * L                # double-buffered x block
             + 2 * f32b * Co * L                  # double-buffered out block
             + itemsize * Ci * (L + K)            # padded halo copy
             + itemsize * Ci * K * L              # im2col stack
             + 3 * f32b * Co * L                  # conv / spec / sum temporaries
             + 2 * f32b * (Ci + Co) * 2 * M       # DFT coefficients
             + 4 * f32b * Ci * Co * max(M, 128))  # lane-padded complex-mix temps
    bt = max(1, min(max_bt, B, (usable - const_bytes) // max(per_b, 1)))
    if B >= 2:
        bt = min(bt, -(-B // 2))        # keep >= 2 grid steps (2-TC sharding on v7x)
    bt = int(bt)
    footprint = const_bytes + bt * per_b
    vmem_limit = int(min(0.85 * cap, max(32 * 1024 * 1024, 1.5 * footprint)))
    return bt, vmem_limit


def fourier_layer(x, conv_w, conv_b, wr, wi, *, padding, stride,
                  block_batch=8, mxu_dtype=jnp.float32):
    """out = Conv1d(x) + SpectralConv1d(x), fused in one gridded Pallas kernel."""
    B, Ci, L = x.shape
    Co, Ci_w, K = conv_w.shape
    M = wr.shape[-1]
    assert stride == 1, "only stride=1 keeps conv / spectral output lengths equal"
    assert 2 * padding == K - 1, "conv output length must equal input length"
    assert Ci_w == Ci and wr.shape[:2] == (Ci, Co) and wi.shape == wr.shape
    assert M <= L // 2 + 1

    itemsize = jnp.dtype(mxu_dtype).itemsize
    bt, vmem_limit = _pick_batch_tile_and_vmem(B, Ci, Co, L, K, M,
                                               block_batch, itemsize)
    nb = pl.cdiv(B, bt)

    # hoisted, computed once per call; resident (single-buffered) in VMEM
    fcat, gcat = _dft_bases(L, M)
    fcat = fcat.astype(mxu_dtype)
    gcat = gcat.astype(mxu_dtype)
    # w2d[o, t*Ci + i] = conv_w[o, i, t]   (tap-major, matches the im2col stack)
    w2d = jnp.transpose(conv_w, (0, 2, 1)).reshape(Co, K * Ci).astype(mxu_dtype)
    cb = conv_b.reshape(Co, 1).astype(jnp.float32)

    resident = pl.BlockSpec(memory_space=pltpu.MemorySpace.VMEM)

    return pl.pallas_call(
        _fourier_layer_kernel,
        out_shape=jax.ShapeDtypeStruct((B, Co, L), jnp.float32),
        grid=(nb,),
        in_specs=[
            pl.BlockSpec((bt, Ci, L), lambda i: (i, 0, 0)),   # x: pipelined over batch
            resident, resident, resident, resident,           # w2d, cb, wr, wi
            resident, resident,                               # fcat, gcat
        ],
        out_specs=pl.BlockSpec((bt, Co, L), lambda i: (i, 0, 0)),
        compiler_params=pltpu.CompilerParams(
            dimension_semantics=("parallel",),
            vmem_limit_bytes=vmem_limit),
    )(x.astype(mxu_dtype), w2d, cb,
      wr.astype(jnp.float32), wi.astype(jnp.float32), fcat, gcat)


def _ref_forward(x, conv_w, conv_b, wr, wi, modes, padding):
    """Pure-JAX reference mirroring torch FourierLayer.forward (rfft/irfft)."""
    B, Ci, L = x.shape
    Co = conv_w.shape[0]
    x1 = lax.conv_general_dilated(
        x, conv_w, window_strides=(1,), padding=[(padding, padding)],
        dimension_numbers=("NCH", "OIH", "NCH"),
        precision=lax.Precision.HIGHEST) + conv_b[None, :, None]
    xft = jnp.fft.rfft(x)
    wc = wr.astype(jnp.complex64) + 1j * wi.astype(jnp.complex64)
    y = jnp.einsum("bix,iox->box", xft[:, :, :modes], wc,
                   precision=lax.Precision.HIGHEST)
    full = jnp.zeros((B, Co, L // 2 + 1), jnp.complex64).at[:, :, :modes].set(y)
    x2 = jnp.fft.irfft(full, n=L)
    return x1 + x2


if __name__ == "__main__":
    B, C, L = 4, 8, 16
    kernel_size, padding, stride, modes = 3, 1, 1, 8     # modes <= L//2 + 1

    key = jax.random.PRNGKey(0)
    kx, kw, kb, kr, ki = jax.random.split(key, 5)
    x = jax.random.normal(kx, (B, C, L), dtype=jnp.float32)

    bound = 1.0 / math.sqrt(C * kernel_size)             # torch Conv1d default init range
    conv_w = jax.random.uniform(kw, (C, C, kernel_size), jnp.float32, -bound, bound)
    conv_b = jax.random.uniform(kb, (C,), jnp.float32, -bound, bound)
    scale = 1.0 / (C * C)                                # SpectralConv1d scale
    wr = scale * jax.random.uniform(kr, (C, C, modes), jnp.float32)
    wi = scale * jax.random.uniform(ki, (C, C, modes), jnp.float32)

    out = fourier_layer(x, conv_w, conv_b, wr, wi, padding=padding, stride=stride)
    out = jax.block_until_ready(out)
    assert out.shape == (B, C, L) and out.dtype == jnp.float32

    ref = _ref_forward(x, conv_w, conv_b, wr, wi, modes, padding)
    max_err = float(jnp.max(jnp.abs(out - ref)))
    if not bool(jnp.allclose(out, ref, rtol=1e-3, atol=1e-3)):
        raise AssertionError(
            f"Pallas kernel mismatch vs JAX reference, max abs err = {max_err}")

    print("KERNEL_OK")
</pallas_src>

<mosaic_0001>
module attributes {stable_mosaic.version = 11 : i64} {
  func.func @_fourier_layer_kernel(%arg0: i32, %arg1: memref<2x8x16xf32, #tpu.memory_space<vmem>>, %arg2: memref<8x24xf32, #tpu.memory_space<vmem>>, %arg3: memref<8x1xf32, #tpu.memory_space<vmem>>, %arg4: memref<8x8x8xf32, #tpu.memory_space<vmem>>, %arg5: memref<8x8x8xf32, #tpu.memory_space<vmem>>, %arg6: memref<16x16xf32, #tpu.memory_space<vmem>>, %arg7: memref<16x16xf32, #tpu.memory_space<vmem>>, %arg8: memref<2x8x16xf32, #tpu.memory_space<vmem>>) attributes {dimension_semantics = [#tpu.dimension_semantics<parallel>], iteration_bounds = array<i64: 2>, scalar_prefetch = 0 : i64, scratch_operands = 0 : i64, tpu.core_type = #tpu.core_type<tc>, window_params = [{transform_indices = @transform_0, window_bounds = array<i64: 2, 8, 16>}, {pipeline_mode = #tpu.pipeline_mode<synchronous>, transform_indices = @transform_1, window_bounds = array<i64: 8, 24>}, {pipeline_mode = #tpu.pipeline_mode<synchronous>, transform_indices = @transform_2, window_bounds = array<i64: 8, 1>}, {pipeline_mode = #tpu.pipeline_mode<synchronous>, transform_indices = @transform_3, window_bounds = array<i64: 8, 8, 8>}, {pipeline_mode = #tpu.pipeline_mode<synchronous>, transform_indices = @transform_4, window_bounds = array<i64: 8, 8, 8>}, {pipeline_mode = #tpu.pipeline_mode<synchronous>, transform_indices = @transform_5, window_bounds = array<i64: 16, 16>}, {pipeline_mode = #tpu.pipeline_mode<synchronous>, transform_indices = @transform_6, window_bounds = array<i64: 16, 16>}, {transform_indices = @transform_7, window_bounds = array<i64: 2, 8, 16>}]} {
    %c0 = arith.constant 0 : index
    %c0_0 = arith.constant 0 : index
    %c0_1 = arith.constant 0 : index
    %0 = vector.load %arg1[%c0, %c0_0, %c0_1] : memref<2x8x16xf32, #tpu.memory_space<vmem>>, vector<2x8x16xf32>
    %c0_2 = arith.constant 0 : index
    %c0_3 = arith.constant 0 : index
    %1 = vector.load %arg2[%c0_2, %c0_3] : memref<8x24xf32, #tpu.memory_space<vmem>>, vector<8x24xf32>
    %c0_4 = arith.constant 0 : index
    %c0_5 = arith.constant 0 : index
    %2 = vector.load %arg3[%c0_4, %c0_5] : memref<8x1xf32, #tpu.memory_space<vmem>>, vector<8x1xf32>
    %c0_6 = arith.constant 0 : index
    %c0_7 = arith.constant 0 : index
    %c0_8 = arith.constant 0 : index
    %3 = vector.load %arg4[%c0_6, %c0_7, %c0_8] : memref<8x8x8xf32, #tpu.memory_space<vmem>>, vector<8x8x8xf32>
    %c0_9 = arith.constant 0 : index
    %c0_10 = arith.constant 0 : index
    %c0_11 = arith.constant 0 : index
    %4 = vector.load %arg5[%c0_9, %c0_10, %c0_11] : memref<8x8x8xf32, #tpu.memory_space<vmem>>, vector<8x8x8xf32>
    %c0_12 = arith.constant 0 : index
    %c0_13 = arith.constant 0 : index
    %5 = vector.load %arg6[%c0_12, %c0_13] : memref<16x16xf32, #tpu.memory_space<vmem>>, vector<16x16xf32>
    %c0_14 = arith.constant 0 : index
    %c0_15 = arith.constant 0 : index
    %6 = vector.load %arg7[%c0_14, %c0_15] : memref<16x16xf32, #tpu.memory_space<vmem>>, vector<16x16xf32>
    %cst = arith.constant 0.000000e+00 : f32
    %7 = vector.broadcast %cst : f32 to vector<2x8x1xf32>
    %8 = tpu.concatenate %7, %0, %7 in 2 : vector<2x8x1xf32>, vector<2x8x16xf32>, vector<2x8x1xf32> -> vector<2x8x18xf32>
    %9 = vector.extract_strided_slice %8 {offsets = [0, 0, 0], sizes = [2, 8, 16], strides = [1, 1, 1]} : vector<2x8x18xf32> to vector<2x8x16xf32>
    %10 = vector.extract_strided_slice %8 {offsets = [0, 0, 1], sizes = [2, 8, 16], strides = [1, 1, 1]} : vector<2x8x18xf32> to vector<2x8x16xf32>
    %11 = vector.extract_strided_slice %8 {offsets = [0, 0, 2], sizes = [2, 8, 16], strides = [1, 1, 1]} : vector<2x8x18xf32> to vector<2x8x16xf32>
    %12 = tpu.concatenate %9, %10, %11 in 1 : vector<2x8x16xf32>, vector<2x8x16xf32>, vector<2x8x16xf32> -> vector<2x24x16xf32>
    %13 = vector.shape_cast %1 : vector<8x24xf32> to vector<1x8x24xf32>
    %14 = vector.shape_cast %13 : vector<1x8x24xf32> to vector<1x8x24xf32>
    %15 = vector.broadcast %14 : vector<1x8x24xf32> to vector<2x8x24xf32>
    "tpu.trace_start"() <{level = 10 : i32, message = "boc,bcl->bol"}> : () -> ()
    %cst_16 = arith.constant dense<0.000000e+00> : vector<2x8x16xf32>
    %16 = tpu.matmul %15, %12, %cst_16 {dimension_numbers = #tpu.dot_dimension_numbers<[2], [1], [1], [2], [0, 0, 0, 1, 1, 2], [0], [0]>} : vector<2x8x24xf32>, vector<2x24x16xf32>, vector<2x8x16xf32> -> vector<2x8x16xf32>
    "tpu.trace_stop"() : () -> ()
    %17 = vector.shape_cast %0 : vector<2x8x16xf32> to vector<16x16xf32>
    %cst_17 = arith.constant dense<0.000000e+00> : vector<16x16xf32>
    %18 = tpu.matmul %17, %5, %cst_17 {dimension_numbers = #tpu.dot_dimension_numbers<[1], [0], [0], [1], [0, 0, 1, 1], [], []>} : vector<16x16xf32>, vector<16x16xf32>, vector<16x16xf32> -> vector<16x16xf32>
    %19 = vector.shape_cast %18 : vector<16x16xf32> to vector<2x8x16xf32>
    %20 = vector.extract_strided_slice %19 {offsets = [0, 0, 0], sizes = [2, 8, 8], strides = [1, 1, 1]} : vector<2x8x16xf32> to vector<2x8x8xf32>
    %21 = vector.shape_cast %20 : vector<2x8x8xf32> to vector<2x8x1x8xf32>
    %22 = vector.extract_strided_slice %19 {offsets = [0, 0, 8], sizes = [2, 8, 8], strides = [1, 1, 1]} : vector<2x8x16xf32> to vector<2x8x8xf32>
    %23 = vector.shape_cast %22 : vector<2x8x8xf32> to vector<2x8x1x8xf32>
    %24 = vector.shape_cast %3 : vector<8x8x8xf32> to vector<1x8x8x8xf32>
    %25 = vector.broadcast %21 : vector<2x8x1x8xf32> to vector<2x8x8x8xf32>
    %26 = vector.broadcast %24 : vector<1x8x8x8xf32> to vector<2x8x8x8xf32>
    %27 = arith.mulf %25, %26 : vector<2x8x8x8xf32>
    %28 = vector.shape_cast %4 : vector<8x8x8xf32> to vector<1x8x8x8xf32>
    %29 = vector.broadcast %23 : vector<2x8x1x8xf32> to vector<2x8x8x8xf32>
    %30 = vector.broadcast %28 : vector<1x8x8x8xf32> to vector<2x8x8x8xf32>
    %31 = arith.mulf %29, %30 : vector<2x8x8x8xf32>
    %32 = arith.subf %27, %31 : vector<2x8x8x8xf32>
    %cst_18 = arith.constant dense<0.000000e+00> : vector<2x8x8xf32>
    %33 = vector.multi_reduction <add>, %32, %cst_18 [1] : vector<2x8x8x8xf32> to vector<2x8x8xf32>
    %34 = vector.shape_cast %4 : vector<8x8x8xf32> to vector<1x8x8x8xf32>
    %35 = vector.broadcast %21 : vector<2x8x1x8xf32> to vector<2x8x8x8xf32>
    %36 = vector.broadcast %34 : vector<1x8x8x8xf32> to vector<2x8x8x8xf32>
    %37 = arith.mulf %35, %36 : vector<2x8x8x8xf32>
    %38 = vector.shape_cast %3 : vector<8x8x8xf32> to vector<1x8x8x8xf32>
    %39 = vector.broadcast %23 : vector<2x8x1x8xf32> to vector<2x8x8x8xf32>
    %40 = vector.broadcast %38 : vector<1x8x8x8xf32> to vector<2x8x8x8xf32>
    %41 = arith.mulf %39, %40 : vector<2x8x8x8xf32>
    %42 = arith.addf %37, %41 : vector<2x8x8x8xf32>
    %cst_19 = arith.constant dense<0.000000e+00> : vector<2x8x8xf32>
    %43 = vector.multi_reduction <add>, %42, %cst_19 [1] : vector<2x8x8x8xf32> to vector<2x8x8xf32>
    %44 = tpu.concatenate %33, %43 in 2 : vector<2x8x8xf32>, vector<2x8x8xf32> -> vector<2x8x16xf32>
    %45 = vector.shape_cast %44 : vector<2x8x16xf32> to vector<16x16xf32>
    %cst_20 = arith.constant dense<0.000000e+00> : vector<16x16xf32>
    %46 = tpu.matmul %45, %6, %cst_20 {dimension_numbers = #tpu.dot_dimension_numbers<[1], [0], [0], [1], [0, 0, 1, 1], [], []>} : vector<16x16xf32>, vector<16x16xf32>, vector<16x16xf32> -> vector<16x16xf32>
    %47 = vector.shape_cast %46 : vector<16x16xf32> to vector<2x8x16xf32>
    %48 = arith.addf %16, %47 : vector<2x8x16xf32>
    %49 = vector.shape_cast %2 : vector<8x1xf32> to vector<1x8x1xf32>
    %50 = vector.broadcast %49 : vector<1x8x1xf32> to vector<2x8x16xf32>
    %51 = arith.addf %48, %50 : vector<2x8x16xf32>
    %c0_21 = arith.constant 0 : index
    %c0_22 = arith.constant 0 : index
    %c0_23 = arith.constant 0 : index
    %52 = vector.load %arg8[%c0_21, %c0_22, %c0_23] : memref<2x8x16xf32, #tpu.memory_space<vmem>>, vector<2x8x16xf32>
    tpu.vector_store %arg8[%c0_21, %c0_22, %c0_23], %51 {strides = array<i32>} : memref<2x8x16xf32, #tpu.memory_space<vmem>>, vector<2x8x16xf32>,
    return
  }
  func.func @transform_0(%arg0: i32) -> (i32, i32, i32) {
    %c0_i32 = arith.constant 0 : i32
    %c0_i32_0 = arith.constant 0 : i32
    %c0_i32_1 = arith.constant 0 : i32
    return %arg0, %c0_i32, %c0_i32_0 : i32, i32, i32
  }
  func.func @transform_1(%arg0: i32) -> (i32, i32) {
    %c0_i32 = arith.constant 0 : i32
    %c0_i32_0 = arith.constant 0 : i32
    %c0_i32_1 = arith.constant 0 : i32
    return %c0_i32, %c0_i32_0 : i32, i32
  }
  func.func @transform_2(%arg0: i32) -> (i32, i32) {
    %c0_i32 = arith.constant 0 : i32
    %c0_i32_0 = arith.constant 0 : i32
    %c0_i32_1 = arith.constant 0 : i32
    return %c0_i32, %c0_i32_0 : i32, i32
  }
  func.func @transform_3(%arg0: i32) -> (i32, i32, i32) {
    %c0_i32 = arith.constant 0 : i32
    %c0_i32_0 = arith.constant 0 : i32
    %c0_i32_1 = arith.constant 0 : i32
    %c0_i32_2 = arith.constant 0 : i32
    return %c0_i32, %c0_i32_0, %c0_i32_1 : i32, i32, i32
  }
  func.func @transform_4(%arg0: i32) -> (i32, i32, i32) {
    %c0_i32 = arith.constant 0 : i32
    %c0_i32_0 = arith.constant 0 : i32
    %c0_i32_1 = arith.constant 0 : i32
    %c0_i32_2 = arith.constant 0 : i32
    return %c0_i32, %c0_i32_0, %c0_i32_1 : i32, i32, i32
  }
  func.func @transform_5(%arg0: i32) -> (i32, i32) {
    %c0_i32 = arith.constant 0 : i32
    %c0_i32_0 = arith.constant 0 : i32
    %c0_i32_1 = arith.constant 0 : i32
    return %c0_i32, %c0_i32_0 : i32, i32
  }
  func.func @transform_6(%arg0: i32) -> (i32, i32) {
    %c0_i32 = arith.constant 0 : i32
    %c0_i32_0 = arith.constant 0 : i32
    %c0_i32_1 = arith.constant 0 : i32
    return %c0_i32, %c0_i32_0 : i32, i32
  }
  func.func @transform_7(%arg0: i32) -> (i32, i32, i32) {
    %c0_i32 = arith.constant 0 : i32
    %c0_i32_0 = arith.constant 0 : i32
    %c0_i32_1 = arith.constant 0 : i32
    return %arg0, %c0_i32, %c0_i32_0 : i32, i32, i32
  }
}

</mosaic_0001>

<bundles_post_ra>
// kernel: tpu_custom_call.1
= control target key start
LH: loop header
LB: loop body
LE: loop exit
PB: predicated region body
PF: predicated region fallthrough
CT: control target
= control target key end

     0   :  { %12 = vsyncpa [#allocation3], 0  ;;  %s2402_s0 = inlined_call_operand.hbm [shape: f32[4,8,16], index: 0, kind: input, shape index: {}]   ;;  %s2403_s1 = inlined_call_operand.vmem [shape: f32[8,24], index: 1, kind: input, shape index: {}]   ;;  %s2404_s2 = inlined_call_operand.vmem [shape: f32[8,1], index: 2, kind: input, shape index: {}]   ;;  %s2405_s3 = inlined_call_operand.hbm [shape: f32[8,8,8], index: 3, kind: input, shape index: {}]   ;;  %s2406_s4 = inlined_call_operand.hbm [shape: f32[8,8,8], index: 4, kind: input, shape index: {}]   ;;  %s2407_s5 = inlined_call_operand.vmem [shape: f32[16,16], index: 5, kind: input, shape index: {}]   ;;  %s2408_s6 = inlined_call_operand.hbm [shape: f32[16,16], index: 6, kind: input, shape index: {}]   ;;  %s2409_s7 = inlined_call_operand.hbm [shape: f32[4,8,16], index: 7, kind: output, shape index: {}]  }
   0x1   :  { %14 = vsyncpa [#allocation3 + $0x1], 0 }
   0x2   :  { %15 = vsyncpa [#allocation6], 0 }
   0x3   :  { %16 = vsyncpa [#allocation9], 0 }
   0x4   :  { %17 = vsyncpa [#allocation4], 0 }
   0x5   :  { %19 = vsyncpa [#allocation4 + $0x1], 0  ;;  %s1805_s24 = smov 0   ;;  %s1807_s25 = smov 0  }
   0x6   :  { %s1809_s26 = smov 0   ;;  %s1811_s27 = smov 0  }
   0x7 LB: > { %s1826_s28 = sadd.s32 4294967295, %s1744_s27   ;;  %s1364_s29 = sadd.s32 4294967294, %s1744_s27   ;;  %s1744_s27 = sphi %s1811_s27, %s2435_s27   ;;  %s1740_s26 = sphi %s1809_s26, %s2434_s26   ;;  %s1736_s25 = sphi %s1807_s25, %s2433_s25   ;;  %s1732_s24 = sphi %s1805_s24, %s2432_s24  }
   0x8   : > { %p45_p0 = scmp.ne.s32.totalorder %s1736_s25, %s1732_s24  ;;  %p2410_p1 = scmp.eq.s32.totalorder %s1826_s28, 0 }
   0x9   : > { %p201_p3 = scmp.eq.s32.totalorder %s1364_s29, 1  ;;  %p1365_p5 = scmp.ge.s32.totalorder %s1744_s27, 1 }
   0xa   : > { %p1835_p4 = por %p2410_p1, %p45_p0  ;;  %p208_p7 = scmp.lt.s32.totalorder %s1744_s27, 3 }
   0xb   : > { %p1840_p6 = por %p201_p3, %p45_p0  ;;  %s1746_s10 = smov [#allocation5]  }
   0xc   : > { %s2414_s30 = scalar_select %p1835_p4, 1, 0 }
   0xd   : > { %s2415_s8 = scalar_select %p1840_p6, 1, 0 }
   0xe   : > { %p1845_p8 = pnand %p1365_p5, %p208_p7  ;;  %s226_s11 = sshll.u32 %s1746_s10, 4  ;;  %s1849_s11 = int_to_ptr.vmem [resolvable:$true] %s226_s11 }
   0xf   : > { %2416 = sst [smem:[#allocation15_spill]] %s2415_s8  ;;  %s1747_s13 = smov [#allocation7]  }
  0x10   : > { %s2417_s9 = scalar_select %p1845_p8, 1, 0 }
  0x11   : > { %p1474_p9 = pneg %p1845_p8  ;;  %s239_s14 = sshll.u32 %s1747_s13, 4  ;;  %s1860_s14 = int_to_ptr.vmem [resolvable:$true] %s239_s14 }
  0x12   : > { %s1748_s15 = smov [#allocation8]   ;;  %s1556_s19 = scalar_lea.hbm %s2405_s3, 1024 }
  0x13   : > { %p1856_p11 = pnand %p1474_p9, %p2410_p1  ;;  %s1862_s16 = sshll.u32 %s1748_s15, 4  ;;  %s256_s16 = int_to_ptr.vmem [resolvable:$true] %s1862_s16 }
  0x14   : > { %p1557_p12 = scmp.ne.s32.totalorder %s2405_s3, %s1556_s19  ;;  %p1563_p5 = scmp.lt.u32.totalorder %s1556_s19, %s2405_s3 }
  0x15   : > { %p1872_p13 = pneg %p1856_p11 }
  0x17   : > { %p1559_p0 = pnand %p1872_p13, %p1557_p12 }
  0x19   : > { %p1560_p3 = pneg %p1559_p0 }
  0x1b   : > { %p1565_p7 = pnand %p1563_p5, %p1560_p3 }
  0x1d   : > { %1568 = shalt.err (!%p1565_p7)
}
  0x1e   : > { %s1569_s10 = scalar_lea.vmem %s1849_s11, 1024  ;;  %p1577_p2 = scmp.lt.s32.totalorder %s1849_s11, %s1849_s11 }
  0x1f   : > { %p1570_p9 = scmp.ne.s32.totalorder %s1849_s11, %s1569_s10  ;;  %p1578_p6 = scmp.lt.s32.totalorder %s1569_s10, %s1569_s10 }
  0x21   : > { %p1572_p10 = pnand %p1570_p9, %p1872_p13  ;;  %p1579_p12 = por %p1578_p6, %p1577_p2 }
  0x23   : > { %p1573_p1 = pneg %p1572_p10 }
  0x25   : > { %p1580_p0 = pnand %p1579_p12, %p1573_p1 }
  0x27   : > { %1583 = shalt.err (!%p1580_p0)
}
  0x28   : > { %s1749_s13 = smov 128   ;;  %s1750_s15 = smov 8  }
  0x29   : > { %1477 = dma.hbm_to_vmem [thread:$0]  (!%p1856_p11), %s2405_s3, 1024, %s1849_s11, [#allocation6], %s1749_s13, %s1749_s13, %s1750_s15  }
  0x2a   : > { %s1584_s21 = scalar_lea.hbm %s2406_s4, 1024 }
  0x2b   : > { %p1585_p1 = scmp.ne.s32.totalorder %s2406_s4, %s1584_s21  ;;  %p1591_p10 = scmp.lt.u32.totalorder %s1584_s21, %s2406_s4 }
  0x2d   : > { %p1587_p2 = pnand %p1585_p1, %p1872_p13 }
  0x2f   : > { %p1588_p6 = pneg %p1587_p2 }
  0x31   : > { %p1593_p3 = pnand %p1591_p10, %p1588_p6 }
  0x33   : > { %1596 = shalt.err (!%p1593_p3)
}
  0x34   : > { %s1597_s11 = scalar_lea.vmem %s1860_s14, 1024  ;;  %p1605_p12 = scmp.lt.s32.totalorder %s1860_s14, %s1860_s14 }
  0x35   : > { %p1598_p5 = scmp.ne.s32.totalorder %s1860_s14, %s1597_s11  ;;  %p1606_p0 = scmp.lt.s32.totalorder %s1597_s11, %s1597_s11 }
  0x37   : > { %p1600_p7 = pnand %p1598_p5, %p1872_p13  ;;  %p1607_p1 = por %p1606_p0, %p1605_p12 }
  0x39   : > { %p1601_p9 = pneg %p1600_p7 }
  0x3b   : > { %p1608_p2 = pnand %p1607_p1, %p1601_p9 }
  0x3d   : > { %1611 = shalt.err (!%p1608_p2)
}
  0x3e   : > { %1480 = dma.hbm_to_vmem [thread:$0]  (!%p1856_p11), %s2406_s4, 1024, %s1860_s14, [#allocation6], %s1749_s13, %s1749_s13, %s1750_s15  }
  0x3f   : > { %s1612_s20 = scalar_lea.hbm %s2408_s6, 256 }
  0x40   : > { %p1613_p6 = scmp.ne.s32.totalorder %s2408_s6, %s1612_s20  ;;  %p1619_p5 = scmp.lt.u32.totalorder %s1612_s20, %s2408_s6 }
  0x42   : > { %p1615_p10 = pnand %p1613_p6, %p1872_p13 }
  0x44   : > { %p1616_p3 = pneg %p1615_p10 }
  0x46   : > { %p1621_p7 = pnand %p1619_p5, %p1616_p3 }
  0x48   : > { %1624 = shalt.err (!%p1621_p7)
}
  0x49   : > { %s1625_s11 = scalar_lea.vmem %s256_s16, 256  ;;  %p1633_p1 = scmp.lt.s32.totalorder %s256_s16, %s256_s16 }
  0x4a   : > { %p1626_p9 = scmp.ne.s32.totalorder %s256_s16, %s1625_s11  ;;  %p1634_p2 = scmp.lt.s32.totalorder %s1625_s11, %s1625_s11 }
  0x4c   : > { %p1628_p12 = pnand %p1626_p9, %p1872_p13  ;;  %p1635_p4 = por %p1634_p2, %p1633_p1 }
  0x4e   : > { %p1629_p0 = pneg %p1628_p12 }
  0x50   : > { %p1636_p8 = pnand %p1635_p4, %p1629_p0 }
  0x52   : > { %1639 = shalt.err (!%p1636_p8)
}
  0x53   : > { %1483 = dma.hbm_to_vmem [thread:$0]  (!%p1856_p11), %s2408_s6, 256, %s256_s16, [#allocation9], %s1749_s13, %s1749_s13, %s1750_s15  }
  0x54   : > { %s1945_s22 = sadd.s32 1, %s1744_s27   ;;  %s32_s17 = sadd.s32 1, %s1740_s26 }
  0x55   : > { %s29_s12 = ssub.s32 %s1744_s27, %s1945_s22  ;;  %p39_p8 = scmp.ne.s32.totalorder %s1740_s26, %s1736_s25 }
  0x56   : > { %p30_p4 = scmp.eq.s32.totalorder %s29_s12, 0  ;;  %p40_p13 = scmp.eq.s32.totalorder %s1744_s27, 0 }
  0x57   : > { %p1495_p6 = scmp.lt.s32.totalorder %s1744_s27, 2  ;;  %p2420_p3 = scmp.eq.s32.totalorder %s1826_s28, 1 }
  0x58   : > { %s1955_s18 = scalar_select %p30_p4, %s1740_s26, %s32_s17  }
  0x59   : > { %p41_p10 = por %p40_p13, %p39_p8  ;;  %p1959_p5 = por %p2420_p3, %p39_p8 }
  0x5a   : > { %s269_s20 = sand.u32 1, %s1740_s26   ;;  %s1392_s21 = sshll.u32 %s1744_s27, 8 }
  0x5b   : > { %s1370_s16 = sshll.u32 %s269_s20, 4  ;;  %s1968_s10 = scalar_lea.hbm %s2402_s0, %s1392_s21 }
  0x5c   : > { %s273_s11 = scalar_lea.vmem [#allocation2], %s1370_s16  ;;  %p1970_p11 = pnand %p1495_p6, %p41_p10 }
  0x5d   : > { %s280_s14 = sshll.u32 %s273_s11, 4  ;;  %s1976_s12 = scalar_lea.sflag [#allocation3], %s269_s20  ;;  %s1974_s14 = int_to_ptr.vmem [resolvable:$true] %s280_s14 }
  0x5e   : > { %s1640_s17 = scalar_lea.hbm %s1968_s10, 256  ;;  %p1642_p9 = pneg %p1970_p11 }
  0x5f   : > { %p1641_p7 = scmp.ne.s32.totalorder %s1968_s10, %s1640_s17  ;;  %s1645_s23 = scalar_lea.hbm %s2402_s0, 512 }
  0x60   : > { %p1646_p1 = scmp.lt.u32.totalorder %s1968_s10, %s2402_s0  ;;  %p1647_p2 = scmp.lt.u32.totalorder %s1645_s23, %s1640_s17 }
  0x61   : > { %p1643_p12 = pnand %p1642_p9, %p1641_p7  ;;  %p1649_p8 = scmp.lt.u32.totalorder %s1640_s17, %s1968_s10 }
  0x62   : > { %p1648_p4 = por %p1647_p2, %p1646_p1 }
  0x63   : > { %p1644_p0 = pneg %p1643_p12 }
  0x64   : > { %p1650_p13 = por %p1649_p8, %p1648_p4 }
  0x66   : > { %p1651_p6 = pnand %p1650_p13, %p1644_p0 }
  0x68   : > { %1654 = shalt.err (!%p1651_p6)
}
  0x69   : > { %s1655_s20 = scalar_lea.vmem %s1974_s14, 256  ;;  %s1751_s21 = smov [#allocation2]  }
  0x6a   : > { %p1656_p10 = scmp.ne.s32.totalorder %s1974_s14, %s1655_s20  ;;  %s1660_s16 = sshll.u32 %s1751_s21, 4  ;;  %s1661_s16 = int_to_ptr.vmem [resolvable:$false] %s1660_s16 }
  0x6b   : > { %s1662_s29 = scalar_lea.vmem %s1661_s16, 512  ;;  %p1663_p12 = scmp.lt.s32.totalorder %s1974_s14, %s1661_s16 }
  0x6c   : > { %p1658_p3 = pnand %p1656_p10, %p1642_p9  ;;  %p1664_p1 = scmp.lt.s32.totalorder %s1662_s29, %s1655_s20 }
  0x6e   : > { %p1659_p7 = pneg %p1658_p3  ;;  %p1665_p2 = por %p1664_p1, %p1663_p12 }
  0x70   : > { %p1666_p4 = pnand %p1665_p2, %p1659_p7 }
  0x72   : > { %1669 = shalt.err (!%p1666_p4)
}
  0x73   : > { %1487 = dma.hbm_to_vmem [thread:$0]  (!%p1970_p11), %s1968_s10, 256, %s1974_s14, %s1976_s12, %s1749_s13, %s1749_s13, %s1750_s15  }
  0x74   : > { %p2423_p9 = scmp.ne.s32.totalorder %s2417_s9, 0 }
  0x75   : > { %s2010_s17 = sand.u32 (!%p2423_p9), 1, %s1736_s25   ;;  %p2424_p0 = scmp.ne.s32.totalorder (!%p2423_p9), %s2414_s30, 0 }
  0x76   : > { %292 = sbr.rel (%p2423_p9) target bundleno = 871 (0x367), region = 48  ;;  %s1374_s23 = sshll.u32 (!%p2423_p9), %s2010_s17, 4 }
  0x77   : > { %s295_s11 = scalar_lea.sflag (!%p2423_p9), [#allocation3], %s2010_s17  ;;  %s298_s8 = scalar_lea.vmem (!%p2423_p9), [#allocation2], %s1374_s23 }
  0x7d   : > { %1715 = dma.done.wait (%p2424_p0), %s295_s11, 256  }
  0x7e   : > { %1717 = vsyncadd (%p2424_p0), %s295_s11, 4294967040  ;;  %p2425_p11 = scmp.eq.s32.totalorder %s1826_s28, 0 }
  0x80   : > { %1719 = dma.done.wait (%p2425_p11), [#allocation6], 2048   ;;  %p2426_p8 = pmov %p2425_p11 }
  0x82   : > { %1721 = vsyncadd (%p2426_p8), [#allocation6], 4294965248  ;;  %p2427_p13 = pmov %p2426_p8 }
  0x83   : > { %p2428_p6 = pmov %p2426_p8 }
  0x84   : > { %1723 = dma.done.wait (%p2427_p13), [#allocation9], 256  }
  0x85   : > { %1725 = vsyncadd (%p2428_p6), [#allocation9], 4294967040  ;;  %vm395_vm0 = vcmask 130048   ;;  %v363_v0 = vld [vmem:[%s2407_s5] sm:$0xff]  ;;  %v364_v1 = vld [vmem:[%s2407_s5 + $0x8] sm:$0xff]  ;;  %s1752_s10 = smov 8   ;;  %v481_v23 = vlaneseq }
  0x86   : > { %v2034_v2 = vld [vmem:[%s298_s8] sm:$0xff]  ;;  %v1442_v3 = vpack.c.bf16 %v364_v1, %v363_v0  ;;  %v2046_v6 = vld [vmem:[#allocation5 + $0x8] sm:$0xff]  ;;  %v2048_v7 = vld [vmem:[#allocation5 + $0x18] sm:$0xff]  ;;  %v1753_v21 = vmov 1966171168   ;;  %s1754_s14 = smov 120  }
  0x87   : > { %1414 = vmatprep.mubr.msk.f32.mxu0 %vm395_vm0, %v2034_v2  ;;  %v2038_v4 = vld [vmem:[#allocation5] sm:$0xff]  ;;  %v2040_v5 = vld [vmem:[#allocation5 + $0x10] sm:$0xff]  ;;  %v2050_v8 = vld [vmem:[%s298_s8 + $0x8] sm:$0xff]  ;;  %v479_v22 = vunpack.c.l.s4 %v1753_v21  ;;  %v482_v25 = vshrl.u32 %v481_v23, 7  ;;  %s1755_s12 = smov 1   ;;  %vm799_vm1 = vcmask 64512  }
  0x88   : > { %854 = vrot.lane.b32.xlu0 %v2038_v4, %s1752_s10  ;;  %858 = vrot.lane.b32.xlu1 %v2040_v5, %s1752_s10  ;;  %v2058_v9 = vld [vmem:[#allocation5 + $0x20] sm:$0xff]  ;;  %v2060_v10 = vld [vmem:[#allocation5 + $0x28] sm:$0xff]  ;;  %v2066_v11 = vld [vmem:[#allocation5 + $0x30] sm:$0xff]  ;;  %vm375_vm2 = vcmask 7168   ;;  %vm378_vm3 = vcmask 138240   ;;  %vm1757_vm4 = vmmov 0  }
  0x89   : > { %1443 = vmatprep.subr.bf16.mxu0 %v1442_v3  ;;  %v2068_v12 = vld [vmem:[#allocation5 + $0x38] sm:$0xff]  ;;  %v2074_v13 = vld [vmem:[#allocation7] sm:$0xff]  ;;  %v2076_v14 = vld [vmem:[#allocation7 + $0x8] sm:$0xff]  ;;  %v480_v24 = vunpack.c.0.s8 %v479_v22  ;;  %v2106_v33 = vsub.s32 0, %v482_v25  ;;  %s1760_s20 = smov 127   ;;  %s1761_s21 = smov 126  }
  0x8a   : > { %1445 = vmatpush3.bf16.msra.mxu0 %v1442_v3  ;;  %v2082_v15 = vld [vmem:[#allocation7 + $0x10] sm:$0xff]  ;;  %v2084_v16 = vld [vmem:[#allocation7 + $0x18] sm:$0xff]  ;;  %v2090_v17 = vld [vmem:[#allocation7 + $0x20] sm:$0xff]  ;;  %vm1762_vm5 = vmmov 1   ;;  %vm1095_vm7 = vcmask 195584   ;;  %s340_s9 = scalar_lea.vmem [#allocation10], %s1374_s23 }
  0x8b   : > { %v2092_v18 = vld [vmem:[#allocation7 + $0x28] sm:$0xff]  ;;  %v2098_v19 = vld [vmem:[#allocation7 + $0x30] sm:$0xff]  ;;  %v2100_v20 = vld [vmem:[#allocation7 + $0x38] sm:$0xff]  ;;  %v483_v26 = vsub.s32 %v480_v24, %v482_v25  ;;  %s1262_s13 = sshll.u32 %s340_s9, 4  ;;  %s1393_s15 = sshll.u32 %s1826_s28, 8  ;;  %s2350_s13 = int_to_ptr.vmem [resolvable:$true] %s1262_s13 }
  0x8c   : > { %856 = vrot.lane.b32.xlu0 %v2046_v6, %s1752_s10  ;;  %860 = vrot.lane.b32.xlu1 %v2048_v7, %s1752_s10  ;;  %vm1452_vm6 = vmpackc.low %vm1762_vm5, %vm378_vm3  ;;  %s2356_s23 = scalar_lea.hbm %s2409_s7, %s1393_s15  ;;  %s1670_s28 = scalar_lea.vmem %s2350_s13, 256 }
  0x8d   : > { %1415 = vmatmul.mubr.msk.f32.vlgmr.msra.gmra.mrb[0].mxu0 %vm395_vm0, %v2050_v8  ;;  %p1671_p10 = scmp.ne.s32.totalorder %s2350_s13, %s1670_s28 }
  0x8f   : > { %p1672_p3 = pnand %p1671_p10, %p1959_p5 }
  0x90   : > { %862 = vrot.lane.b32.xlu0 %v2058_v9, %s1752_s10  ;;  %864 = vrot.lane.b32.xlu1 %v2060_v10, %s1752_s10 }
  0x91   : > { %p1673_p7 = pneg %p1672_p3 }
  0x94   : > { %866 = vrot.lane.b32.xlu0 %v2066_v11, %s1752_s10  ;;  %868 = vrot.lane.b32.xlu1 %v2068_v12, %s1752_s10 }
  0x98   : > { %679 = vrot.lane.b32.xlu0 %v2074_v13, %s1752_s10  ;;  %681 = vrot.lane.b32.xlu1 %v2076_v14, %s1752_s10 }
  0x9c   : > { %683 = vrot.lane.b32.xlu0 %v2082_v15, %s1752_s10  ;;  %685 = vrot.lane.b32.xlu1 %v2084_v16, %s1752_s10 }
  0xa0   : > { %687 = vrot.lane.b32.xlu0 %v2090_v17, %s1752_s10  ;;  %689 = vrot.lane.b32.xlu1 %v2092_v18, %s1752_s10 }
  0xa4   : > { %691 = vrot.lane.b32.xlu0 %v2098_v19, %s1752_s10  ;;  %693 = vrot.lane.b32.xlu1 %v2100_v20, %s1752_s10 }
  0xfa   : > { %v855_v36 = vpop.permute.xlu0 %854  ;;  %v859_v58 = vpop.permute.xlu1 %858 }
  0xfe   : > { %v857_v43 = vpop.permute.xlu0 %856 }
 0x102   : > { %v863_v62 = vpop.permute.xlu0 %862 }
 0x160   : > { %v1416_v27 = vpop.f32.mrb[0].mxu0 }
 0x161   : > { %v533_v28 = vrot.slane %v1416_v27, %v483_v26  ;;  %v466_v29 = vpop.f32.mrb[1].mxu0  ;;  %v526_v37 = vcombine.high %v1416_v27, %v1416_v27 }
 0x162   : > { %v484_v30 = vrot.slane %v466_v29, %v483_v26  ;;  %v477_v41 = vcombine.high %v466_v29, %v466_v29  ;;  %v861_v29 = vpop.permute.xlu1 %860 }
 0x163   : > { %v541_v31 = vcombine.high %v533_v28, %v533_v28  ;;  %v549_v32 = vrot.slane %v533_v28, %v483_v26  ;;  %v540_v44 = vrot.slane %v526_v37, %v483_v26 }
 0x164   : > { %v492_v35 = vcombine.high %v484_v30, %v484_v30  ;;  %v500_v39 = vrot.slane %v484_v30, %v483_v26  ;;  %v491_v48 = vrot.slane %v477_v41, %v483_v26  ;;  %v867_v30 = vpop.permute.xlu0 %866 }
 0x165   : > { %v563_v34 = vrot.slane %v541_v31, %v483_v26  ;;  %v2109_v38 = vrot.slane %v549_v32, %v2106_v33  ;;  %v571_v45 = vcombine.high %v549_v32, %v549_v32  ;;  %v556_v52 = vrot.slane %v540_v44, %v483_v26 }
 0x166   : > { %v514_v42 = vrot.slane %v492_v35, %v483_v26  ;;  %v2115_v46 = vrot.slane %v500_v39, %v2106_v33  ;;  %v522_v49 = vcombine.high %v500_v39, %v500_v39  ;;  %v507_v55 = vrot.slane %v491_v48, %v483_v26  ;;  %v865_v39 = vpop.permute.xlu1 %864 }
 0x167   : > { %v2112_v40 = vrot.slane %v563_v34, %v2106_v33  ;;  %v886_v47 = vmul.f32 %v855_v36, %v2109_v38  ;;  %v2125_v53 = vrot.slane %v571_v45, %v2106_v33  ;;  %v572_v59 = vcombine.high %v556_v52, %v556_v52 }
 0x168   : > { %v2119_v50 = vrot.slane %v514_v42, %v2106_v33  ;;  %v878_v54 = vmul.f32 %v855_v36, %v2115_v46  ;;  %v2129_v56 = vrot.slane %v522_v49, %v2106_v33  ;;  %v2135_v60 = vrot.slane %v556_v52, %v2106_v33 }
 0x169   : > { %v887_v51 = vmul.f32 %v857_v43, %v2112_v40  ;;  %926 = vrot.lane.b32.xlu1 %v886_v47, %s1754_s14  ;;  %v888_v61 = vmul.f32 %v859_v58, %v2125_v53  ;;  %v542_v63 = vcombine.high %v540_v44, %v540_v44  ;;  %v573_v0 = vcombine.high %v563_v34, %v563_v34 }
 0x16a   : > { %v879_v57 = vmul.f32 %v857_v43, %v2119_v50  ;;  %v2139_v1 = vrot.slane %v507_v55, %v2106_v33  ;;  %v880_v3 = vmul.f32 %v859_v58, %v2129_v56  ;;  %v493_v21 = vcombine.high %v491_v48, %v491_v48  ;;  %v869_v52 = vpop.permute.xlu1 %868 }
 0x16b   : > { %928 = vrot.lane.b32.xlu0 %v887_v51, %s1754_s14  ;;  %v524_v22 = vcombine.high %v514_v42, %v514_v42  ;;  %v2145_v23 = vrot.slane %v572_v59, %v2106_v33  ;;  %v890_v24 = vmul.f32 %v863_v62, %v2135_v60  ;;  %v570_v25 = vrot.slane %v542_v63, %v483_v26 }
 0x16c   : > { %v2149_v27 = vrot.slane %v573_v0, %v2106_v33  ;;  %v882_v28 = vmul.f32 %v863_v62, %v2139_v1  ;;  %v521_v31 = vrot.slane %v493_v21, %v483_v26  ;;  %v523_v35 = vcombine.high %v507_v55, %v507_v55 }
 0x16d   : > { %910 = vrot.lane.b32.xlu1 %v878_v54, %s1754_s14  ;;  %v2155_v32 = vrot.slane %v524_v22, %v2106_v33  ;;  %v892_v34 = vmul.f32 %v867_v30, %v2145_v23  ;;  %v2159_v36 = vrot.slane %v570_v25, %v2106_v33  ;;  %v574_v41 = vcombine.high %v570_v25, %v570_v25 }
 0x16e   : > { %v889_v37 = vmul.f32 %v861_v29, %v2149_v27  ;;  %v2165_v42 = vrot.slane %v521_v31, %v2106_v33  ;;  %v525_v43 = vcombine.high %v521_v31, %v521_v31  ;;  %v2169_v44 = vrot.slane %v523_v35, %v2106_v33 }
 0x16f   : > { %912 = vrot.lane.b32.xlu0 %v879_v57, %s1754_s14  ;;  %v881_v26 = vmul.f32 %v861_v29, %v2155_v32  ;;  %v891_v45 = vmul.f32 %v865_v39, %v2159_v36  ;;  %v2175_v47 = vrot.slane %v574_v41, %v2106_v33  ;;  %v680_v57 = vpop.permute.xlu0 %679 }
 0x170   : > { %v883_v48 = vmul.f32 %v865_v39, %v2165_v42  ;;  %v2179_v49 = vrot.slane %v525_v43, %v2106_v33  ;;  %v884_v51 = vmul.f32 %v867_v30, %v2169_v44  ;;  %v682_v33 = vpop.permute.xlu1 %681  ;;  %v703_v59 = vmul.f32 %v680_v57, %v2115_v46 }
 0x171   : > { %930 = vrot.lane.b32.xlu1 %v888_v61, %s1754_s14  ;;  %v893_v54 = vmul.f32 %v869_v52, %v2175_v47  ;;  %v704_v58 = vmul.f32 %v682_v33, %v2119_v50  ;;  %v712_v61 = vmul.f32 %v682_v33, %v2112_v40  ;;  %v711_v62 = vmul.f32 %v680_v57, %v2109_v38 }
 0x172   : > { %v885_v55 = vmul.f32 %v869_v52, %v2179_v49 }
 0x173   : > { %914 = vrot.lane.b32.xlu0 %v880_v3, %s1754_s14  ;;  %v684_v63 = vpop.permute.xlu0 %683 }
 0x174   : > { %v686_v0 = vpop.permute.xlu1 %685 }
 0x175   : > { %934 = vrot.lane.b32.xlu1 %v890_v24, %s1754_s14  ;;  %v714_v3 = vmul.f32 %v686_v0, %v2149_v27  ;;  %v706_v21 = vmul.f32 %v686_v0, %v2155_v32 }
 0x177   : > { %918 = vrot.lane.b32.xlu0 %v882_v28, %s1754_s14  ;;  %v688_v22 = vpop.permute.xlu0 %687 }
 0x178   : > { %v715_v24 = vmul.f32 %v688_v22, %v2135_v60  ;;  %v707_v25 = vmul.f32 %v688_v22, %v2139_v1  ;;  %v690_v28 = vpop.permute.xlu1 %689 }
 0x179   : > { %938 = vrot.lane.b32.xlu1 %v892_v34, %s1754_s14  ;;  %v716_v29 = vmul.f32 %v690_v28, %v2159_v36  ;;  %v708_v30 = vmul.f32 %v690_v28, %v2165_v42 }
 0x17b   : > { %932 = vrot.lane.b32.xlu0 %v889_v37, %s1754_s14  ;;  %v692_v31 = vpop.permute.xlu0 %691 }
 0x17c   : > { %v717_v34 = vmul.f32 %v692_v31, %v2145_v23  ;;  %v709_v35 = vmul.f32 %v692_v31, %v2169_v44  ;;  %v694_v37 = vpop.permute.xlu1 %693 }
 0x17d   : > { %916 = vrot.lane.b32.xlu1 %v881_v26, %s1754_s14  ;;  %v718_v39 = vmul.f32 %v694_v37, %v2175_v47  ;;  %v710_v41 = vmul.f32 %v694_v37, %v2179_v49  ;;  %v838_v26 = vmul.f32 %v2109_v38, %v2074_v13 }
 0x17f   : > { %936 = vrot.lane.b32.xlu0 %v891_v45, %s1754_s14  ;;  %v839_v45 = vmul.f32 %v2112_v40, %v2076_v14 }
 0x181   : > { %920 = vrot.lane.b32.xlu1 %v883_v48, %s1754_s14 }
 0x183   : > { %922 = vrot.lane.b32.xlu0 %v884_v51, %s1754_s14 }
 0x185   : > { %940 = vrot.lane.b32.xlu1 %v893_v54, %s1754_s14  ;;  %v830_v54 = vmul.f32 %v2115_v46, %v2074_v13 }
 0x187   : > { %924 = vrot.lane.b32.xlu0 %v885_v55, %s1754_s14 }
 0x189   : > { %371 = vrot.lane.b32.xlu1 %v2050_v8, %s1755_s12  ;;  %v705_v8 = vmul.f32 %v684_v63, %v2129_v56 }
 0x18b   : > { %369 = vrot.lane.b32.xlu0 %v2034_v2, %s1755_s12  ;;  %v713_v2 = vmul.f32 %v684_v63, %v2125_v53  ;;  %s1249_s12 = scalar_lea.sflag [#allocation4], %s2010_s17 }
 0x18d   : > { %737 = vrot.lane.b32.xlu1 %v704_v58, %s1754_s14  ;;  %v831_v58 = vmul.f32 %v2119_v50, %v2076_v14 }
 0x18f   : > { %735 = vrot.lane.b32.xlu0 %v703_v59, %s1754_s14 }
 0x191   : > { %753 = vrot.lane.b32.xlu1 %v712_v61, %s1754_s14 }
 0x193   : > { %751 = vrot.lane.b32.xlu0 %v711_v62, %s1754_s14 }
 0x195   : > { %755 = vrot.lane.b32.xlu1 %v713_v2, %s1754_s14  ;;  %v840_v2 = vmul.f32 %v2125_v53, %v2082_v15 }
 0x197   : > { %739 = vrot.lane.b32.xlu0 %v705_v8, %s1754_s14 }
 0x199   : > { %757 = vrot.lane.b32.xlu1 %v714_v3, %s1754_s14  ;;  %v832_v3 = vmul.f32 %v2129_v56, %v2082_v15 }
 0x19b   : > { %741 = vrot.lane.b32.xlu0 %v706_v21, %s1754_s14 }
 0x19d   : > { %759 = vrot.lane.b32.xlu1 %v715_v24, %s1754_s14 }
 0x19f   : > { %743 = vrot.lane.b32.xlu0 %v707_v25, %s1754_s14 }
 0x1a1   : > { %761 = vrot.lane.b32.xlu1 %v716_v29, %s1754_s14 }
 0x1a3   : > { %745 = vrot.lane.b32.xlu0 %v708_v30, %s1754_s14 }
 0x1a5   : > { %763 = vrot.lane.b32.xlu1 %v717_v34, %s1754_s14 }
 0x1a7   : > { %747 = vrot.lane.b32.xlu0 %v709_v35, %s1754_s14  ;;  %v842_v35 = vmul.f32 %v2135_v60, %v2090_v17 }
 0x1a9   : > { %765 = vrot.lane.b32.xlu1 %v718_v39, %s1754_s14  ;;  %v841_v39 = vmul.f32 %v2149_v27, %v2084_v16 }
 0x1ab   : > { %749 = vrot.lane.b32.xlu0 %v710_v41, %s1754_s14 }
 0x1db   : > { %v927_v43 = vpop.permute.xlu1 %926 }
 0x1dc   : > { %v966_v48 = vadd.f32 %v927_v43, %v838_v26  ;;  %v834_v43 = vmul.f32 %v2139_v1, %v2090_v17 }
 0x1dd   : > { %v929_v51 = vpop.permute.xlu0 %928 }
 0x1de   : > { %v967_v52 = vadd.f32 %v929_v51, %v839_v45  ;;  %v989_v55 = vsel %vm799_vm1, %v966_v48, 0.0  ;;  %v833_v45 = vmul.f32 %v2155_v32, %v2084_v16  ;;  %v844_v48 = vmul.f32 %v2145_v23, %v2098_v19 }
 0x1df   : > { %v911_v57 = vpop.permute.xlu1 %910 }
 0x1e0   : > { %v990_v33 = vsel %vm799_vm1, %v967_v52, 0.0  ;;  %v958_v61 = vadd.f32 %v911_v57, %v830_v54  ;;  %v843_v54 = vmul.f32 %v2159_v36, %v2092_v18 }
 0x1e1   : > { %v991_v59 = vadd.f32 %v990_v33, %v989_v55  ;;  %v913_v62 = vpop.permute.xlu0 %912 }
 0x1e2   : > { %v959_v63 = vadd.f32 %v913_v62, %v831_v58  ;;  %v974_v8 = vsel %vm799_vm1, %v958_v61, 0.0 }
 0x1e3   : > { %v931_v13 = vpop.permute.xlu1 %930 }
 0x1e4   : > { %v975_v0 = vsel %vm799_vm1, %v959_v63, 0.0  ;;  %v968_v22 = vadd.f32 %v931_v13, %v840_v2  ;;  %v835_v63 = vmul.f32 %v2165_v42, %v2092_v18  ;;  %v836_v13 = vmul.f32 %v2169_v44, %v2098_v19 }
 0x1e5   : > { %v976_v21 = vadd.f32 %v975_v0, %v974_v8  ;;  %v915_v24 = vpop.permute.xlu0 %914  ;;  %v845_v18 = vmul.f32 %v2175_v47, %v2100_v20 }
 0x1e6   : > { %v960_v25 = vadd.f32 %v915_v24, %v832_v3  ;;  %v992_v14 = vsel %vm799_vm1, %v968_v22, 0.0 }
 0x1e7   : > { %v993_v28 = vadd.f32 %v992_v14, %v991_v59  ;;  %v935_v30 = vpop.permute.xlu1 %934 }
 0x1e8   : > { %v977_v29 = vsel %vm799_vm1, %v960_v25, 0.0  ;;  %v970_v41 = vadd.f32 %v935_v30, %v842_v35 }
 0x1e9   : > { %v978_v31 = vadd.f32 %v977_v29, %v976_v21  ;;  %v919_v34 = vpop.permute.xlu0 %918 }
 0x1ea   : > { %v962_v55 = vadd.f32 %v919_v34, %v834_v43  ;;  %v996_v59 = vsel %vm799_vm1, %v970_v41, 0.0  ;;  %v366_v34 = vld [vmem:[#allocation8 + $0x8] sm:$0xff]  ;;  %v1756_v41 = vmov 0.0|0.0  }
 0x1eb   : > { %v939_v37 = vpop.permute.xlu1 %938  ;;  %1450 = vmatprep.subr.bf16.mxu0 %v1756_v41 }
 0x1ec   : > { %v972_v61 = vadd.f32 %v939_v37, %v844_v48  ;;  %v981_v3 = vsel %vm799_vm1, %v962_v55, 0.0 }
 0x1ed   : > { %v933_v15 = vpop.permute.xlu0 %932 }
 0x1ee   : > { %v969_v26 = vadd.f32 %v933_v15, %v841_v39  ;;  %v1000_v25 = vsel %vm799_vm1, %v972_v61, 0.0  ;;  %v837_v39 = vmul.f32 %v2179_v49, %v2100_v20  ;;  %v1758_v61 = vmov 0.0  }
 0x1ef   : > { %v917_v52 = vpop.permute.xlu1 %916  ;;  %1430 = vmatprep.mubr.msk.f32.mxu0 %vm1757_vm4, %v1758_v61 }
 0x1f0   : > { %v994_v51 = vsel %vm799_vm1, %v969_v26, 0.0  ;;  %v961_v57 = vadd.f32 %v917_v52, %v833_v45 }
 0x1f1   : > { %v995_v33 = vadd.f32 %v994_v51, %v993_v28  ;;  %v937_v58 = vpop.permute.xlu0 %936 }
 0x1f2   : > { %v971_v17 = vadd.f32 %v937_v58, %v843_v54  ;;  %v979_v62 = vsel %vm799_vm1, %v961_v57, 0.0 }
 0x1f3   : > { %v997_v16 = vadd.f32 %v996_v59, %v995_v33  ;;  %v980_v2 = vadd.f32 %v979_v62, %v978_v31  ;;  %v921_v0 = vpop.permute.xlu1 %920  ;;  %v365_v31 = vld [vmem:[#allocation8] sm:$0xff]  ;;  %v656_v62 = vmul.f32 %v2119_v50, %v2046_v6 }
 0x1f4   : > { %v998_v8 = vsel %vm799_vm1, %v971_v17, 0.0  ;;  %v963_v22 = vadd.f32 %v921_v0, %v835_v63  ;;  %v1446_v15 = vpack.c.bf16 %v366_v34, %v365_v31 }
 0x1f5   : > { %v999_v21 = vadd.f32 %v998_v8, %v997_v16  ;;  %v923_v24 = vpop.permute.xlu0 %922  ;;  %v982_v14 = vadd.f32 %v981_v3, %v980_v2  ;;  %v655_v2 = vmul.f32 %v2115_v46, %v2038_v4  ;;  %v663_v46 = vmul.f32 %v2109_v38, %v2038_v4 }
 0x1f6   : > { %v964_v28 = vadd.f32 %v923_v24, %v836_v13  ;;  %v983_v29 = vsel %vm799_vm1, %v963_v22, 0.0  ;;  %1447 = vmatprep.subr.bf16.mxu1 %v1446_v15  ;;  %v1759_v13 = vmov 0   ;;  %v657_v4 = vmul.f32 %v2129_v56, %v2040_v5 }
 0x1f7   : > { %v1001_v30 = vadd.f32 %v1000_v25, %v999_v21  ;;  %v984_v35 = vadd.f32 %v983_v29, %v982_v14  ;;  %v941_v37 = vpop.permute.xlu1 %940  ;;  %1449 = vmatpush3.bf16.msra.mxu1 %v1446_v15  ;;  %1554 = vset.pattern.permute.xlu1 %v1759_v13  ;;  %v664_v21 = vmul.f32 %v2112_v40, %v2046_v6  ;;  %v346_v25 = vld [vmem:[%s2404_s2] sm:$0xff] }
 0x1f8   : > { %v985_v19 = vsel %vm799_vm1, %v964_v28, 0.0  ;;  %v973_v26 = vadd.f32 %v941_v37, %v845_v18  ;;  %1454 = vmatprep.subr.bf16.mxu1 %v1756_v41  ;;  %1555 = vset.pattern.permute.xlu0 %v1759_v13  ;;  %v665_v6 = vmul.f32 %v2125_v53, %v2040_v5  ;;  %v669_v13 = vmul.f32 %v2145_v23, %v2066_v11 }
 0x1f9   : > { %v925_v43 = vpop.permute.xlu0 %924  ;;  %v986_v45 = vadd.f32 %v985_v19, %v984_v35 }
 0x1fa   : > { %v965_v48 = vadd.f32 %v925_v43, %v837_v39  ;;  %v1002_v51 = vsel %vm799_vm1, %v973_v26, 0.0  ;;  %v666_v39 = vmul.f32 %v2149_v27, %v2048_v7  ;;  %v658_v26 = vmul.f32 %v2155_v32, %v2048_v7 }
 0x1fb   : > { %v1003_v52 = vadd.f32 %v1002_v51, %v1001_v30  ;;  %v372_v55 = vpop.permute.xlu1 %371  ;;  %v667_v51 = vmul.f32 %v2135_v60, %v2058_v9 }
 0x1fc   : > { %v987_v54 = vsel %vm799_vm1, %v965_v48, 0.0  ;;  %v2270_v20 = vsel %vm375_vm2, 0.0, %v372_v55  ;;  %v659_v55 = vmul.f32 %v2139_v1, %v2058_v9 }
 0x1fd   : > { %v988_v33 = vadd.f32 %v987_v54, %v986_v45  ;;  %v370_v57 = vpop.permute.xlu0 %369  ;;  %v380_v58 = vsel %vm378_vm3, %v2270_v20, 0.0 }
 0x1fe   : > { %v2274_v59 = vsel %vm375_vm2, 0.0, %v370_v57 }
 0x1ff   : > { %v379_v17 = vsel %vm378_vm3, %v2274_v59, 0.0  ;;  %1006 = vrot.lane.b32.xlu1 %v988_v33, %s1752_s10  ;;  %v738_v63 = vpop.permute.xlu1 %737 }
 0x200   : > { %v1549_v16 = vpack.i.bf16 %v380_v58, %v379_v17  ;;  %v784_v8 = vsub.f32 %v656_v62, %v738_v63  ;;  %v660_v63 = vmul.f32 %v2165_v42, %v2060_v10 }
 0x201   : > { %v736_v0 = vpop.permute.xlu0 %735 }
 0x202   : > { %v783_v3 = vsub.f32 %v655_v2, %v736_v0  ;;  %1550 = vrot.lane.b32.xlu0 %v1549_v16, %s1760_s20  ;;  %v801_v50 = vsel %vm799_vm1, %v784_v8, 0.0  ;;  %s1763_s20 = smov [#allocation10]  }
 0x203   : > { %389 = vrot.lane.b32.xlu1 %v379_v17, %s1761_s21  ;;  %v754_v24 = vpop.permute.xlu1 %753  ;;  %v668_v17 = vmul.f32 %v2159_v36, %v2060_v10 }
 0x204   : > { %v800_v22 = vsel %vm799_vm1, %v783_v3, 0.0  ;;  %v792_v28 = vsub.f32 %v664_v21, %v754_v24 }
 0x205   : > { %v802_v14 = vadd.f32 %v801_v50, %v800_v22  ;;  %v752_v29 = vpop.permute.xlu0 %751  ;;  %v661_v50 = vmul.f32 %v2169_v44, %v2066_v11 }
 0x206   : > { %v791_v18 = vsub.f32 %v663_v46, %v752_v29  ;;  %1008 = vrot.lane.b32.xlu0 %v1003_v52, %s1752_s10  ;;  %v816_v40 = vsel %vm799_vm1, %v792_v28, 0.0  ;;  %v662_v29 = vmul.f32 %v2179_v49, %v2068_v12 }
 0x207   : > { %1241 = vperm.xlu1 %1554, %v346_v25   ;;  %v756_v31 = vpop.permute.xlu1 %755  ;;  %v670_v25 = vmul.f32 %v2175_v47, %v2068_v12 }
 0x208   : > { %v815_v30 = vsel %vm799_vm1, %v791_v18, 0.0  ;;  %v793_v34 = vsub.f32 %v665_v6, %v756_v31 }
 0x209   : > { %v817_v38 = vadd.f32 %v816_v40, %v815_v30  ;;  %v740_v35 = vpop.permute.xlu0 %739 }
 0x20a   : > { %v785_v19 = vsub.f32 %v657_v4, %v740_v35  ;;  %391 = vrot.lane.b32.xlu0 %v380_v58, %s1761_s21  ;;  %v818_v37 = vsel %vm799_vm1, %v793_v34, 0.0  ;;  %s1674_s21 = sshll.u32 %s1763_s20, 4  ;;  %s1675_s21 = int_to_ptr.vmem [resolvable:$false] %s1674_s21 }
 0x20b   : > { %v819_v53 = vadd.f32 %v818_v37, %v817_v38  ;;  %v758_v41 = vpop.permute.xlu1 %757  ;;  %s1676_s16 = scalar_lea.vmem %s1675_s21, 512  ;;  %p1677_p12 = scmp.lt.s32.totalorder %s2350_s13, %s1675_s21 }
 0x20c   : > { %v803_v15 = vsel %vm799_vm1, %v785_v19, 0.0  ;;  %v794_v45 = vsub.f32 %v666_v39, %v758_v41  ;;  %p1678_p1 = scmp.lt.s32.totalorder %s1676_s16, %s1670_s28 }
 0x20d   : > { %v804_v43 = vadd.f32 %v803_v15, %v802_v14  ;;  %v742_v5 = vpop.permute.xlu0 %741 }
 0x20e   : > { %v786_v56 = vsub.f32 %v658_v26, %v742_v5  ;;  %v820_v48 = vsel %vm799_vm1, %v794_v45, 0.0  ;;  %p1679_p2 = por %p1678_p1, %p1677_p12 }
 0x20f   : > { %v821_v52 = vadd.f32 %v820_v48, %v819_v53  ;;  %v760_v27 = vpop.permute.xlu1 %759  ;;  %v345_v53 = vld [vmem:[%s2403_s1] sm:$0xff] }
 0x210   : > { %v805_v54 = vsel %vm799_vm1, %v786_v56, 0.0  ;;  %v795_v57 = vsub.f32 %v667_v51, %v760_v27  ;;  %p1680_p4 = pnand %p1679_p2, %p1673_p7 }
 0x211   : > { %v806_v33 = vadd.f32 %v805_v54, %v804_v43  ;;  %v744_v58 = vpop.permute.xlu0 %743 }
 0x212   : > { %v787_v7 = vsub.f32 %v659_v55, %v744_v58  ;;  %v822_v32 = vsel %vm799_vm1, %v795_v57, 0.0 }
 0x213   : > { %v823_v62 = vadd.f32 %v822_v32, %v821_v52  ;;  %v762_v60 = vpop.permute.xlu1 %761 }
 0x214   : > { %v807_v16 = vsel %vm799_vm1, %v787_v7, 0.0  ;;  %v796_v8 = vsub.f32 %v668_v17, %v762_v60 }
 0x215   : > { %v808_v2 = vadd.f32 %v807_v16, %v806_v33  ;;  %v746_v0 = vpop.permute.xlu0 %745 }
 0x216   : > { %v788_v9 = vsub.f32 %v660_v63, %v746_v0  ;;  %v824_v1 = vsel %vm799_vm1, %v796_v8, 0.0 }
 0x217   : > { %v825_v3 = vadd.f32 %v824_v1, %v823_v62  ;;  %v764_v36 = vpop.permute.xlu1 %763 }
 0x218   : > { %v809_v21 = vsel %vm799_vm1, %v788_v9, 0.0  ;;  %v797_v24 = vsub.f32 %v669_v13, %v764_v36 }
 0x219   : > { %v810_v22 = vadd.f32 %v809_v21, %v808_v2  ;;  %v748_v46 = vpop.permute.xlu0 %747 }
 0x21a   : > { %v789_v10 = vsub.f32 %v661_v50, %v748_v46  ;;  %v826_v42 = vsel %vm799_vm1, %v797_v24, 0.0 }
 0x21b   : > { %v827_v14 = vadd.f32 %v826_v42, %v825_v3  ;;  %v766_v23 = vpop.permute.xlu1 %765 }
 0x21c   : > { %v811_v28 = vsel %vm799_vm1, %v789_v10, 0.0  ;;  %v798_v6 = vsub.f32 %v670_v25, %v766_v23 }
 0x21d   : > { %v812_v18 = vadd.f32 %v811_v28, %v810_v22  ;;  %v750_v40 = vpop.permute.xlu0 %749 }
 0x21e   : > { %v790_v11 = vsub.f32 %v662_v29, %v750_v40  ;;  %v828_v44 = vsel %vm799_vm1, %v798_v6, 0.0 }
 0x21f   : > { %v829_v30 = vadd.f32 %v828_v44, %v827_v14 }
 0x220   : > { %v813_v31 = vsel %vm799_vm1, %v790_v11, 0.0 }
 0x221   : > { %v814_v4 = vadd.f32 %v813_v31, %v812_v18 }
 0x271   : > { %v1007_v38 = vpop.permute.xlu1 %1006 }
 0x272   : > { %v1012_v47 = vsel %vm799_vm1, %v814_v4, %v1007_v38 }
 0x273   : > { %1421 = vmatprep.mubr.msk.f32.mxu1 %vm395_vm0, %v1012_v47 }
 0x274   : > { %v1551_v34 = vpop.permute.xlu0 %1550 }
 0x275   : > { %v1553_v35 = vunpack.i.h.bf16 %v1551_v34  ;;  %v1552_v19 = vunpack.i.l.bf16 %v1551_v34 }
 0x277   : > { %v1455_v12 = vpack.c.bf16 %v1553_v35, %v2270_v20  ;;  %v1451_v49 = vpack.c.bf16 %v1552_v19, %v2274_v59  ;;  %v390_v20 = vpop.permute.xlu1 %389 }
 0x278   : > { %v1009_v37 = vpop.permute.xlu0 %1008 }
 0x279   : > { %v1013_v39 = vsel %vm799_vm1, %v829_v30, %v1009_v37  ;;  %1453 = vmatpush3.bf16.msk.msra.mxu0 %vm1452_vm6, %v1451_v49 }
 0x27a   : > { %1422 = vmatmul.mubr.msk.f32.vlgmr.msra.gmra.mrb[0].mxu1 %vm395_vm0, %v1013_v39  ;;  %1428 = vmatprep.subr.mxu0 %v1758_v61 }
 0x27b   : > { %1457 = vmatpush3.bf16.msk.msra.mxu1 %vm1452_vm6, %v1455_v12  ;;  %1439 = vmatprep.mubr.msk.f32.mxu1 %vm1757_vm4, %v1758_v61 }
 0x27c   : > { %v392_v59 = vpop.permute.xlu0 %391  ;;  %1437 = vmatprep.subr.mxu1 %v1758_v61 }
 0x27d   : > { %1429 = vmatpush3.msra.mxu0 %v390_v20 }
 0x27e   : > { %1431 = vmatmul.mubr.msk.f32.vlgmr.msra.gmra.mrb[2].mxu0 %vm1095_vm7, %v345_v53 }
 0x27f   : > { %1438 = vmatpush3.msra.mxu1 %v392_v59 }
 0x280   : > { %1440 = vmatmul.mubr.msk.f32.vlgmr.msra.gmra.mrb[2].mxu1 %vm1095_vm7, %v345_v53 }
 0x286   : > { %v1242_v43 = vpop.permute.xlu1 %1241 }
 0x34d   : > { %v1423_v15 = vpop.f32.mrb[0].mxu1 }
 0x34e   : > { %v1086_v41 = vpop.f32.mrb[1].mxu1 }
 0x351   : > { %v1165_v26 = vpop.f32.mrb[2].mxu0 }
 0x352   : > { %v1166_v45 = vadd.f32 %v1165_v26, %v1086_v41  ;;  %v1432_v5 = vpop.f32.mrb[3].mxu0 }
 0x353   : > { %v1235_v56 = vpop.f32.mrb[2].mxu1 }
 0x354   : > { %v1236_v48 = vadd.f32 %v1423_v15, %v1235_v56  ;;  %v1244_v51 = vadd.f32 %v1242_v43, %v1166_v45  ;;  %v1441_v61 = vpop.f32.mrb[3].mxu1 }
 0x356   : > { %v1245_v52 = vadd.f32 %v1242_v43, %v1236_v48  ;;  %1246 = vst.msk [vmem:[%s340_s9] sm:$0xff] %vm395_vm0, %v1244_v51 }
 0x358   : > { %1247 = vst.msk [vmem:[%s340_s9 + $0x8] sm:$0xff] %vm395_vm0, %v1245_v52 }
 0x359   : > { %1683 = shalt.err (!%p1680_p4)
}
 0x35a   : > { %s1684_s29 = scalar_lea.hbm %s2356_s23, 256  ;;  %s1688_s9 = scalar_lea.hbm %s2409_s7, 512 }
 0x35b   : > { %p1685_p9 = scmp.ne.s32.totalorder %s2356_s23, %s1684_s29  ;;  %p1689_p8 = scmp.lt.u32.totalorder %s2356_s23, %s2409_s7 }
 0x35c   : > { %p1690_p13 = scmp.lt.u32.totalorder %s1688_s9, %s1684_s29  ;;  %p1692_p10 = scmp.lt.u32.totalorder %s1684_s29, %s2356_s23 }
 0x35d   : > { %p1686_p0 = pnand %p1685_p9, %p1959_p5 }
 0x35e   : > { %p1691_p6 = por %p1690_p13, %p1689_p8 }
 0x35f   : > { %p1687_p11 = pneg %p1686_p0 }
 0x360   : > { %p1693_p3 = por %p1692_p10, %p1691_p6 }
 0x362   : > { %p1694_p7 = pnand %p1693_p3, %p1687_p11 }
 0x364   : > { %1697 = shalt.err (!%p1694_p7)
}
 0x365   : > { %s1764_s14 = smov 128  }
 0x366   : > { %1472 = dma.vmem_to_hbm [thread:$0]  (%p1959_p5), %s2350_s13, 256, %s2356_s23, %s1249_s12, %s1764_s14, %s1764_s14, %s1752_s10  }
 0x367 PF: > { %s2429_s28 = sld [smem:[#allocation15_spill]]  ;;  %s1277_s20 = sand.u32 1, %s1732_s24  }
 0x368   : > { %p2431_p1 = scmp.ge.s32.totalorder %s1744_s27, 2  ;;  %s1278_s21 = scalar_lea.sflag [#allocation4], %s1277_s20 }
 0x36d   : > { %p2430_p12 = scmp.ne.s32.totalorder %s2429_s28, 0 }
 0x36f   : > { %p1489_p2 = pnand %p2431_p1, %p2430_p12 }
 0x371   : > { %1727 = dma.done.wait (!%p1489_p2), %s1278_s21, 256  }
 0x372   : > { %1729 = vsyncadd (!%p1489_p2), %s1278_s21, 4294967040  ;;  %p22_p4 = scmp.ge.s32.totalorder %s1945_s22, 4   ;;  %s2432_s24 = smov %s1736_s25 }
 0x373   : > { %s2433_s25 = smov %s1740_s26  ;;  %s2434_s26 = smov %s1955_s18 }
 0x374   : > { %s2435_s27 = smov %s1945_s22  ;;  %24 = sbr.rel (!%p22_p4) target bundleno = 7 (0x7), region = 105 }
 0x37b   :  { %1283 = vsyncpa [#allocation3], 1 }
 0x37c   :  { %1285 = vsyncpa [#allocation3 + $0x1], 1 }
 0x37d   :  { %1286 = vsyncpa [#allocation6], 1 }
 0x37e   :  { %1287 = vsyncpa [#allocation9], 1 }
 0x37f   :  { %1288 = vsyncpa [#allocation4], 1 }
 0x380   :  { %1290 = vsyncpa [#allocation4 + $0x1], 1 }

</bundles_post_ra>
